<compile_context>
chip_gen: v6e
topology: v6e:2x2x1
jax: 0.10.0
libtpu: 0.0.40
codegen_flags: <defaults>
</compile_context>

<pallas_src>
import jax
import jax.numpy as jnp
from jax.experimental import pallas as pl
from jax.experimental.pallas import tpu as pltpu


# ---------------------------------------------------------------------------
# Pallas kernel (one batch tile per grid step)
# ---------------------------------------------------------------------------
def _cvae_kernel(
    # per-tile inputs
    x_ref,        # (Bt, F)   f32
    cond_ref,     # (Bt, C)   f32
    eps_ref,      # (Bt, Lp)  f32 (zero-padded beyond L)
    # encoder params (VMEM-resident, constant index maps)
    we1x_ref,     # (F, Hp)   bf16
    we1c_ref,     # (C, Hp)   bf16
    be1_ref,      # (1, Hp)   f32
    we2_ref,      # (Hp, 2Lp) bf16   fused [mean | logvar] projection, each half Lp-aligned
    be2_ref,      # (1, 2Lp)  f32
    # decoder params
    wd1c_ref,     # (C, Hp)   bf16
    wd1z_ref,     # (Lp, Hp)  bf16
    bd1_ref,      # (1, Hp)   f32
    wd2_ref,      # (Hp, Fp)  bf16
    bd2_ref,      # (1, Fp)   f32
    # packed output
    out_ref,      # (Bt, Fp + 2Lp) f32 = [x_hat | mean | logvar] at 128-aligned offsets
):
    f32 = jnp.float32
    bf16 = jnp.bfloat16
    Lp = eps_ref.shape[1]
    Fp = wd2_ref.shape[1]

    x = x_ref[...].astype(bf16)
    cond = cond_ref[...].astype(bf16)

    # ----- encoder: LeakyReLU(0.2)( [x,cond] @ We1 + be1 ) -----
    h_e = (
        jnp.dot(x, we1x_ref[...], preferred_element_type=f32)
        + jnp.dot(cond, we1c_ref[...], preferred_element_type=f32)
        + be1_ref[...]
    )
    h_e = jnp.maximum(h_e, 0.2 * h_e)

    # ----- fused, lane-aligned mean / logvar projection -----
    stats = jnp.dot(h_e.astype(bf16), we2_ref[...], preferred_element_type=f32) + be2_ref[...]
    mean = stats[:, :Lp]      # 128-aligned slice (free view)
    logvar = stats[:, Lp:]

    # ----- reparameterization: z = mean + eps * exp(logvar / 2) -----
    z = mean + eps_ref[...] * jnp.exp(logvar * 0.5)

    # ----- decoder: LeakyReLU(0.2)( [cond, z] @ Wd1 + bd1 ) -----
    h_d = (
        jnp.dot(cond, wd1c_ref[...], preferred_element_type=f32)
        + jnp.dot(z.astype(bf16), wd1z_ref[...], preferred_element_type=f32)
        + bd1_ref[...]
    )
    h_d = jnp.maximum(h_d, 0.2 * h_d)

    logits = jnp.dot(h_d.astype(bf16), wd2_ref[...], preferred_element_type=f32) + bd2_ref[...]
    x_hat = jax.nn.sigmoid(logits)

    # two 128-aligned, unmasked slice stores (no concat, no XLU shuffles)
    out_ref[:, :Fp] = x_hat
    out_ref[:, Fp:] = stats


# ---------------------------------------------------------------------------
# VMEM budgeting / tile choice
# ---------------------------------------------------------------------------
def _round_up(v, m):
    return ((v + m - 1) // m) * m


def _vmem_footprint_bytes(bt, F, C, Lp, Hp, Fp):
    """Conservative per-kernel VMEM estimate: double-buffered I/O tiles,
    double-buffered (constant-index) weight blocks, and in-kernel temporaries."""
    f32, bf16 = 4, 2
    io_in = 2 * f32 * bt * (F + C + Lp)                    # x, cond, eps (2x pipelined)
    io_out = 2 * f32 * bt * (Fp + 2 * Lp)                  # packed output slab (2x pipelined)
    w_elems = F * Hp + C * Hp + Hp * 2 * Lp + C * Hp + Lp * Hp + Hp * Fp
    weights = 2 * bf16 * w_elems                           # constant blocks still get buffers
    biases = 2 * f32 * (2 * Hp + 2 * Lp + Fp)
    temps = f32 * bt * (2 * Hp + 3 * Lp + Fp) + bf16 * bt * (F + C + 2 * Hp + Lp)
    return int(1.2 * (io_in + io_out + weights + biases + temps))


def _choose_batch_tile(B, budget_bytes, footprint_fn):
    tile = 1024
    while tile > 8 and footprint_fn(tile) > budget_bytes:
        tile //= 2
    tile = min(tile, _round_up(B, 8))
    # Keep >=4 grid steps when the batch is big enough that tiles stay >=256 rows
    # (lets v7x's 2 TensorCores split the "parallel" batch axis without starving the MXU).
    if B >= 4 * 256:
        tile = min(tile, max(256, _round_up((B + 3) // 4, 8)))
    return max(8, (tile // 8) * 8)


def _vmem_capacity_bytes():
    try:
        info = pltpu.get_tpu_info()
        return int(getattr(info, "vmem_capacity_bytes", 64 * 1024 * 1024))
    except Exception:
        return 64 * 1024 * 1024  # safe fallback (v7x per-TC VMEM)


# ---------------------------------------------------------------------------
# Wrapper
# ---------------------------------------------------------------------------
@jax.jit
def cvae_forward(x, cond, eps, params):
    """Runs the CVAE forward pass in a single fused, batch-tiled Pallas kernel.

    Args:
      x:    (B, feature_dim) float32
      cond: (B, cond_dim)    float32
      eps:  (B, latent_dim)  float32 standard-normal noise
      params: dict of pre-transposed / pre-split / lane-padded bf16 kernel parameters.

    Returns:
      (x_hat, mean, logvar)
    """
    B, F = x.shape
    C = cond.shape[1]
    L = eps.shape[1]
    Hp = params["we1x"].shape[1]     # hidden, padded to 128
    Lp = params["wd1z"].shape[0]     # latent, padded to 128
    Fp = params["wd2"].shape[1]      # feature, padded to 128

    # Keep the reparameterization lane-aligned (eps is the smallest input -> cheap pad).
    if Lp != L:
        eps = jnp.pad(eps, ((0, 0), (0, Lp - L)))

    # Chip-aware VMEM budget, communicated to Mosaic explicitly.
    vmem_cap = _vmem_capacity_bytes()
    budget = min(vmem_cap // 2, 64 * 1024 * 1024)   # v5e/v6e -> 64 MiB, v7x -> 32 MiB

    def footprint(bt):
        return _vmem_footprint_bytes(bt, F, C, Lp, Hp, Fp)

    b_tile = _choose_batch_tile(B, budget, footprint)
    vmem_limit = int(min(vmem_cap, max(budget, footprint(b_tile))))

    grid = (pl.cdiv(B, b_tile),)
    out_w = Fp + 2 * Lp

    def row_spec(width):
        return pl.BlockSpec((b_tile, width), lambda i: (i, 0))

    def const_spec(arr):
        return pl.BlockSpec(arr.shape, lambda i: (0, 0))

    packed = pl.pallas_call(
        _cvae_kernel,
        out_shape=jax.ShapeDtypeStruct((B, out_w), jnp.float32),
        grid=grid,
        in_specs=[
            row_spec(F),                    # x
            row_spec(C),                    # cond
            row_spec(Lp),                   # eps (lane-padded)
            const_spec(params["we1x"]),
            const_spec(params["we1c"]),
            const_spec(params["be1"]),
            const_spec(params["we2"]),
            const_spec(params["be2"]),
            const_spec(params["wd1c"]),
            const_spec(params["wd1z"]),
            const_spec(params["bd1"]),
            const_spec(params["wd2"]),
            const_spec(params["bd2"]),
        ],
        out_specs=row_spec(out_w),
        compiler_params=pltpu.CompilerParams(
            dimension_semantics=("parallel",),
            vmem_limit_bytes=vmem_limit,
        ),
    )(
        x, cond, eps,
        params["we1x"], params["we1c"], params["be1"],
        params["we2"], params["be2"],
        params["wd1c"], params["wd1z"], params["bd1"],
        params["wd2"], params["bd2"],
    )

    x_hat = packed[:, :F]
    mean = packed[:, Fp:Fp + L]
    logvar = packed[:, Fp + Lp:Fp + Lp + L]
    return x_hat, mean, logvar


# ---------------------------------------------------------------------------
# Deterministic parameter construction (mirrors PyTorch nn.Linear default init),
# pre-transposed, pre-split, lane-padded to 128, stored in bf16.
# ---------------------------------------------------------------------------
def make_params(key, feature_dim, latent_dim, cond_dim, hidden):
    F, L, C, H = feature_dim, latent_dim, cond_dim, hidden
    Hp = _round_up(H, 128)
    Lp = _round_up(L, 128)
    Fp = _round_up(F, 128)

    def linear(k, in_f, out_f):
        kw, kb = jax.random.split(k)
        bound = 1.0 / jnp.sqrt(in_f)
        w = jax.random.uniform(kw, (out_f, in_f), jnp.float32, -bound, bound)
        b = jax.random.uniform(kb, (out_f,), jnp.float32, -bound, bound)
        return w, b

    k = jax.random.split(key, 4)
    # encoder: Linear(F+C, H) -> LeakyReLU -> Linear(H, 2L) -> Identity
    we1_t, be1 = linear(k[0], F + C, H)
    we2_t, be2 = linear(k[1], H, 2 * L)
    # decoder: Linear(C+L, H) -> LeakyReLU -> Linear(H, F) -> Sigmoid
    wd1_t, bd1 = linear(k[2], C + L, H)
    wd2_t, bd2 = linear(k[3], H, F)

    we1 = we1_t.T          # (F+C, H)
    we2 = we2_t.T          # (H, 2L)
    wd1 = wd1_t.T          # (C+L, H)
    wd2 = wd2_t.T          # (H, F)

    bf16 = jnp.bfloat16

    def pad2(a, rows, cols):
        return jnp.pad(a, ((0, rows - a.shape[0]), (0, cols - a.shape[1])))

    # encoder layer 1, split by input, hidden lane-padded to Hp (zeros -> h_e pad cols = 0)
    we1x = pad2(we1[:F, :], F, Hp).astype(bf16)
    we1c = pad2(we1[F:, :], C, Hp).astype(bf16)
    be1_p = jnp.pad(be1, (0, Hp - H))[None, :]

    # encoder layer 2: fused [mean | logvar], each half placed at a 128-aligned column offset
    we2_p = jnp.zeros((Hp, 2 * Lp), jnp.float32)
    we2_p = we2_p.at[:H, :L].set(we2[:, :L]).at[:H, Lp:Lp + L].set(we2[:, L:])
    be2_p = jnp.zeros((1, 2 * Lp), jnp.float32)
    be2_p = be2_p.at[0, :L].set(be2[:L]).at[0, Lp:Lp + L].set(be2[L:])

    # decoder layer 1 split into cond / z parts ([cond, z] order, as in CVAE.decode)
    wd1c = pad2(wd1[:C, :], C, Hp).astype(bf16)
    wd1z = pad2(wd1[C:, :], Lp, Hp).astype(bf16)   # padded z rows are zero -> z pad cols inert
    bd1_p = jnp.pad(bd1, (0, Hp - H))[None, :]

    # decoder layer 2: hidden rows padded to Hp, feature cols to Fp
    wd2_p = pad2(wd2, Hp, Fp).astype(bf16)
    bd2_p = jnp.pad(bd2, (0, Fp - F))[None, :]

    return {
        "we1x": we1x, "we1c": we1c, "be1": be1_p.astype(jnp.float32),
        "we2": we2_p.astype(bf16), "be2": be2_p.astype(jnp.float32),
        "wd1c": wd1c, "wd1z": wd1z, "bd1": bd1_p.astype(jnp.float32),
        "wd2": wd2_p, "bd2": bd2_p.astype(jnp.float32),
    }


# ---------------------------------------------------------------------------
# Pure-JAX reference mirroring the kernel's bf16/f32 arithmetic (sanity check)
# ---------------------------------------------------------------------------
def cvae_reference(x, cond, eps, params):
    bf16, f32 = jnp.bfloat16, jnp.float32
    F = x.shape[1]
    L = eps.shape[1]
    Lp = params["wd1z"].shape[0]

    xb, cb = x.astype(bf16), cond.astype(bf16)
    h = (jnp.dot(xb, params["we1x"], preferred_element_type=f32)
         + jnp.dot(cb, params["we1c"], preferred_element_type=f32)
         + params["be1"])
    h = jnp.maximum(h, 0.2 * h)
    stats = jnp.dot(h.astype(bf16), params["we2"], preferred_element_type=f32) + params["be2"]
    mean, logvar = stats[:, :L], stats[:, Lp:Lp + L]
    z = mean + eps * jnp.exp(logvar / 2.0)
    z_p = jnp.pad(z, ((0, 0), (0, Lp - L))) if Lp != L else z
    hd = (jnp.dot(cb, params["wd1c"], preferred_element_type=f32)
          + jnp.dot(z_p.astype(bf16), params["wd1z"], preferred_element_type=f32)
          + params["bd1"])
    hd = jnp.maximum(hd, 0.2 * hd)
    logits = jnp.dot(hd.astype(bf16), params["wd2"], preferred_element_type=f32) + params["bd2"]
    x_hat = jax.nn.sigmoid(logits)[:, :F]
    return x_hat, mean, logvar


if __name__ == "__main__":
    # Small, module-consistent shapes.
    B, FEATURE_DIM, LATENT_DIM, COND_DIM, HIDDEN = 8, 16, 8, 8, 32

    root = jax.random.PRNGKey(0)
    k_x, k_c, k_e, k_p = jax.random.split(root, 4)

    x = jax.random.normal(k_x, (B, FEATURE_DIM), jnp.float32)
    cond = jax.random.normal(k_c, (B, COND_DIM), jnp.float32)
    eps = jax.random.normal(k_e, (B, LATENT_DIM), jnp.float32)

    params = make_params(k_p, FEATURE_DIM, LATENT_DIM, COND_DIM, HIDDEN)

    x_hat, mean, logvar = cvae_forward(x, cond, eps, params)
    jax.block_until_ready((x_hat, mean, logvar))

    # Sanity check against the pure-JAX reference (same bf16 weights / f32 accumulation).
    x_hat_r, mean_r, logvar_r = cvae_reference(x, cond, eps, params)
    assert x_hat.shape == (B, FEATURE_DIM)
    assert mean.shape == (B, LATENT_DIM)
    assert logvar.shape == (B, LATENT_DIM)
    assert jnp.allclose(x_hat, x_hat_r, atol=2e-3, rtol=2e-3)
    assert jnp.allclose(mean, mean_r, atol=2e-3, rtol=2e-3)
    assert jnp.allclose(logvar, logvar_r, atol=2e-3, rtol=2e-3)

    print("KERNEL_OK")
</pallas_src>

<mosaic_0001>
module attributes {stable_mosaic.version = 11 : i64} {
  func.func @_cvae_kernel(%arg0: i32, %arg1: memref<8x16xf32, #tpu.memory_space<vmem>>, %arg2: memref<8x8xf32, #tpu.memory_space<vmem>>, %arg3: memref<8x128xf32, #tpu.memory_space<vmem>>, %arg4: memref<16x128xbf16, #tpu.memory_space<vmem>>, %arg5: memref<8x128xbf16, #tpu.memory_space<vmem>>, %arg6: memref<1x128xf32, #tpu.memory_space<vmem>>, %arg7: memref<128x256xbf16, #tpu.memory_space<vmem>>, %arg8: memref<1x256xf32, #tpu.memory_space<vmem>>, %arg9: memref<8x128xbf16, #tpu.memory_space<vmem>>, %arg10: memref<128x128xbf16, #tpu.memory_space<vmem>>, %arg11: memref<1x128xf32, #tpu.memory_space<vmem>>, %arg12: memref<128x128xbf16, #tpu.memory_space<vmem>>, %arg13: memref<1x128xf32, #tpu.memory_space<vmem>>, %arg14: memref<8x384xf32, #tpu.memory_space<vmem>>) attributes {dimension_semantics = [#tpu.dimension_semantics<parallel>], iteration_bounds = array<i64: 1>, scalar_prefetch = 0 : i64, scratch_operands = 0 : i64, tpu.core_type = #tpu.core_type<tc>, window_params = [{transform_indices = @transform_0, window_bounds = array<i64: 8, 16>}, {transform_indices = @transform_1, window_bounds = array<i64: 8, 8>}, {transform_indices = @transform_2, window_bounds = array<i64: 8, 128>}, {pipeline_mode = #tpu.pipeline_mode<synchronous>, transform_indices = @transform_3, window_bounds = array<i64: 16, 128>}, {pipeline_mode = #tpu.pipeline_mode<synchronous>, transform_indices = @transform_4, window_bounds = array<i64: 8, 128>}, {pipeline_mode = #tpu.pipeline_mode<synchronous>, transform_indices = @transform_5, window_bounds = array<i64: 1, 128>}, {pipeline_mode = #tpu.pipeline_mode<synchronous>, transform_indices = @transform_6, window_bounds = array<i64: 128, 256>}, {pipeline_mode = #tpu.pipeline_mode<synchronous>, transform_indices = @transform_7, window_bounds = array<i64: 1, 256>}, {pipeline_mode = #tpu.pipeline_mode<synchronous>, transform_indices = @transform_8, window_bounds = array<i64: 8, 128>}, {pipeline_mode = #tpu.pipeline_mode<synchronous>, transform_indices = @transform_9, window_bounds = array<i64: 128, 128>}, {pipeline_mode = #tpu.pipeline_mode<synchronous>, transform_indices = @transform_10, window_bounds = array<i64: 1, 128>}, {pipeline_mode = #tpu.pipeline_mode<synchronous>, transform_indices = @transform_11, window_bounds = array<i64: 128, 128>}, {pipeline_mode = #tpu.pipeline_mode<synchronous>, transform_indices = @transform_12, window_bounds = array<i64: 1, 128>}, {transform_indices = @transform_13, window_bounds = array<i64: 8, 384>}]} {
    %c0 = arith.constant 0 : index
    %c0_0 = arith.constant 0 : index
    %0 = vector.load %arg1[%c0, %c0_0] : memref<8x16xf32, #tpu.memory_space<vmem>>, vector<8x16xf32>
    %1 = arith.truncf %0 : vector<8x16xf32> to vector<8x16xbf16>
    %c0_1 = arith.constant 0 : index
    %c0_2 = arith.constant 0 : index
    %2 = vector.load %arg2[%c0_1, %c0_2] : memref<8x8xf32, #tpu.memory_space<vmem>>, vector<8x8xf32>
    %3 = arith.truncf %2 : vector<8x8xf32> to vector<8x8xbf16>
    %c0_3 = arith.constant 0 : index
    %c0_4 = arith.constant 0 : index
    %4 = vector.load %arg4[%c0_3, %c0_4] : memref<16x128xbf16, #tpu.memory_space<vmem>>, vector<16x128xbf16>
    %cst = arith.constant dense<0.000000e+00> : vector<8x128xf32>
    %5 = tpu.matmul %1, %4, %cst {dimension_numbers = #tpu.dot_dimension_numbers<[1], [0], [0], [1], [0, 0, 1, 1], [], []>} : vector<8x16xbf16>, vector<16x128xbf16>, vector<8x128xf32> -> vector<8x128xf32>
    %c0_5 = arith.constant 0 : index
    %c0_6 = arith.constant 0 : index
    %6 = vector.load %arg5[%c0_5, %c0_6] : memref<8x128xbf16, #tpu.memory_space<vmem>>, vector<8x128xbf16>
    %cst_7 = arith.constant dense<0.000000e+00> : vector<8x128xf32>
    %7 = tpu.matmul %3, %6, %cst_7 {dimension_numbers = #tpu.dot_dimension_numbers<[1], [0], [0], [1], [0, 0, 1, 1], [], []>} : vector<8x8xbf16>, vector<8x128xbf16>, vector<8x128xf32> -> vector<8x128xf32>
    %8 = arith.addf %5, %7 : vector<8x128xf32>
    %c0_8 = arith.constant 0 : index
    %c0_9 = arith.constant 0 : index
    %9 = vector.load %arg6[%c0_8, %c0_9] : memref<1x128xf32, #tpu.memory_space<vmem>>, vector<1x128xf32>
    %10 = vector.broadcast %9 : vector<1x128xf32> to vector<8x128xf32>
    %11 = arith.addf %8, %10 : vector<8x128xf32>
    %cst_10 = arith.constant 2.000000e-01 : f32
    %12 = vector.broadcast %cst_10 : f32 to vector<8x128xf32>
    %13 = arith.mulf %12, %11 : vector<8x128xf32>
    %14 = arith.maximumf %11, %13 : vector<8x128xf32>
    %15 = arith.truncf %14 : vector<8x128xf32> to vector<8x128xbf16>
    %c0_11 = arith.constant 0 : index
    %c0_12 = arith.constant 0 : index
    %16 = vector.load %arg7[%c0_11, %c0_12] : memref<128x256xbf16, #tpu.memory_space<vmem>>, vector<128x256xbf16>
    %cst_13 = arith.constant dense<0.000000e+00> : vector<8x256xf32>
    %17 = tpu.matmul %15, %16, %cst_13 {dimension_numbers = #tpu.dot_dimension_numbers<[1], [0], [0], [1], [0, 0, 1, 1], [], []>} : vector<8x128xbf16>, vector<128x256xbf16>, vector<8x256xf32> -> vector<8x256xf32>
    %c0_14 = arith.constant 0 : index
    %c0_15 = arith.constant 0 : index
    %18 = vector.load %arg8[%c0_14, %c0_15] : memref<1x256xf32, #tpu.memory_space<vmem>>, vector<1x256xf32>
    %19 = vector.broadcast %18 : vector<1x256xf32> to vector<8x256xf32>
    %20 = arith.addf %17, %19 : vector<8x256xf32>
    %21 = vector.extract_strided_slice %20 {offsets = [0, 0], sizes = [8, 128], strides = [1, 1]} : vector<8x256xf32> to vector<8x128xf32>
    %22 = vector.extract_strided_slice %20 {offsets = [0, 128], sizes = [8, 128], strides = [1, 1]} : vector<8x256xf32> to vector<8x128xf32>
    %c0_16 = arith.constant 0 : index
    %c0_17 = arith.constant 0 : index
    %23 = vector.load %arg3[%c0_16, %c0_17] : memref<8x128xf32, #tpu.memory_space<vmem>>, vector<8x128xf32>
    %cst_18 = arith.constant 5.000000e-01 : f32
    %24 = vector.broadcast %cst_18 : f32 to vector<8x128xf32>
    %25 = arith.mulf %22, %24 : vector<8x128xf32>
    %26 = math.exp %25 : vector<8x128xf32>
    %27 = arith.mulf %23, %26 : vector<8x128xf32>
    %28 = arith.addf %21, %27 : vector<8x128xf32>
    %c0_19 = arith.constant 0 : index
    %c0_20 = arith.constant 0 : index
    %29 = vector.load %arg9[%c0_19, %c0_20] : memref<8x128xbf16, #tpu.memory_space<vmem>>, vector<8x128xbf16>
    %cst_21 = arith.constant dense<0.000000e+00> : vector<8x128xf32>
    %30 = tpu.matmul %3, %29, %cst_21 {dimension_numbers = #tpu.dot_dimension_numbers<[1], [0], [0], [1], [0, 0, 1, 1], [], []>} : vector<8x8xbf16>, vector<8x128xbf16>, vector<8x128xf32> -> vector<8x128xf32>
    %31 = arith.truncf %28 : vector<8x128xf32> to vector<8x128xbf16>
    %c0_22 = arith.constant 0 : index
    %c0_23 = arith.constant 0 : index
    %32 = vector.load %arg10[%c0_22, %c0_23] : memref<128x128xbf16, #tpu.memory_space<vmem>>, vector<128x128xbf16>
    %cst_24 = arith.constant dense<0.000000e+00> : vector<8x128xf32>
    %33 = tpu.matmul %31, %32, %cst_24 {dimension_numbers = #tpu.dot_dimension_numbers<[1], [0], [0], [1], [0, 0, 1, 1], [], []>} : vector<8x128xbf16>, vector<128x128xbf16>, vector<8x128xf32> -> vector<8x128xf32>
    %34 = arith.addf %30, %33 : vector<8x128xf32>
    %c0_25 = arith.constant 0 : index
    %c0_26 = arith.constant 0 : index
    %35 = vector.load %arg11[%c0_25, %c0_26] : memref<1x128xf32, #tpu.memory_space<vmem>>, vector<1x128xf32>
    %36 = vector.broadcast %35 : vector<1x128xf32> to vector<8x128xf32>
    %37 = arith.addf %34, %36 : vector<8x128xf32>
    %cst_27 = arith.constant 2.000000e-01 : f32
    %38 = vector.broadcast %cst_27 : f32 to vector<8x128xf32>
    %39 = arith.mulf %38, %37 : vector<8x128xf32>
    %40 = arith.maximumf %37, %39 : vector<8x128xf32>
    %41 = arith.truncf %40 : vector<8x128xf32> to vector<8x128xbf16>
    %c0_28 = arith.constant 0 : index
    %c0_29 = arith.constant 0 : index
    %42 = vector.load %arg12[%c0_28, %c0_29] : memref<128x128xbf16, #tpu.memory_space<vmem>>, vector<128x128xbf16>
    %cst_30 = arith.constant dense<0.000000e+00> : vector<8x128xf32>
    %43 = tpu.matmul %41, %42, %cst_30 {dimension_numbers = #tpu.dot_dimension_numbers<[1], [0], [0], [1], [0, 0, 1, 1], [], []>} : vector<8x128xbf16>, vector<128x128xbf16>, vector<8x128xf32> -> vector<8x128xf32>
    %c0_31 = arith.constant 0 : index
    %c0_32 = arith.constant 0 : index
    %44 = vector.load %arg13[%c0_31, %c0_32] : memref<1x128xf32, #tpu.memory_space<vmem>>, vector<1x128xf32>
    %45 = vector.broadcast %44 : vector<1x128xf32> to vector<8x128xf32>
    %46 = arith.addf %43, %45 : vector<8x128xf32>
    %47 = arith.negf %46 : vector<8x128xf32>
    %48 = math.exp %47 : vector<8x128xf32>
    %cst_33 = arith.constant 1.000000e+00 : f32
    %49 = vector.broadcast %cst_33 : f32 to vector<8x128xf32>
    %50 = arith.addf %49, %48 : vector<8x128xf32>
    %51 = arith.divf %49, %50 : vector<8x128xf32>
    %c0_34 = arith.constant 0 : index
    %c0_35 = arith.constant 0 : index
    %52 = vector.load %arg14[%c0_34, %c0_35] : memref<8x384xf32, #tpu.memory_space<vmem>>, vector<8x128xf32>
    tpu.vector_store %arg14[%c0_34, %c0_35], %51 {strides = array<i32>} : memref<8x384xf32, #tpu.memory_space<vmem>>, vector<8x128xf32>,
    %c0_36 = arith.constant 0 : index
    %c128 = arith.constant 128 : index
    %53 = vector.load %arg14[%c0_36, %c128] : memref<8x384xf32, #tpu.memory_space<vmem>>, vector<8x256xf32>
    tpu.vector_store %arg14[%c0_36, %c128], %20 {strides = array<i32>} : memref<8x384xf32, #tpu.memory_space<vmem>>, vector<8x256xf32>,
    return
  }
  func.func @transform_0(%arg0: i32) -> (i32, i32) {
    %c0_i32 = arith.constant 0 : i32
    %c0_i32_0 = arith.constant 0 : i32
    return %arg0, %c0_i32 : i32, i32
  }
  func.func @transform_1(%arg0: i32) -> (i32, i32) {
    %c0_i32 = arith.constant 0 : i32
    %c0_i32_0 = arith.constant 0 : i32
    return %arg0, %c0_i32 : i32, i32
  }
  func.func @transform_2(%arg0: i32) -> (i32, i32) {
    %c0_i32 = arith.constant 0 : i32
    %c0_i32_0 = arith.constant 0 : i32
    return %arg0, %c0_i32 : i32, i32
  }
  func.func @transform_3(%arg0: i32) -> (i32, i32) {
    %c0_i32 = arith.constant 0 : i32
    %c0_i32_0 = arith.constant 0 : i32
    %c0_i32_1 = arith.constant 0 : i32
    return %c0_i32, %c0_i32_0 : i32, i32
  }
  func.func @transform_4(%arg0: i32) -> (i32, i32) {
    %c0_i32 = arith.constant 0 : i32
    %c0_i32_0 = arith.constant 0 : i32
    %c0_i32_1 = arith.constant 0 : i32
    return %c0_i32, %c0_i32_0 : i32, i32
  }
  func.func @transform_5(%arg0: i32) -> (i32, i32) {
    %c0_i32 = arith.constant 0 : i32
    %c0_i32_0 = arith.constant 0 : i32
    %c0_i32_1 = arith.constant 0 : i32
    return %c0_i32, %c0_i32_0 : i32, i32
  }
  func.func @transform_6(%arg0: i32) -> (i32, i32) {
    %c0_i32 = arith.constant 0 : i32
    %c0_i32_0 = arith.constant 0 : i32
    %c0_i32_1 = arith.constant 0 : i32
    return %c0_i32, %c0_i32_0 : i32, i32
  }
  func.func @transform_7(%arg0: i32) -> (i32, i32) {
    %c0_i32 = arith.constant 0 : i32
    %c0_i32_0 = arith.constant 0 : i32
    %c0_i32_1 = arith.constant 0 : i32
    return %c0_i32, %c0_i32_0 : i32, i32
  }
  func.func @transform_8(%arg0: i32) -> (i32, i32) {
    %c0_i32 = arith.constant 0 : i32
    %c0_i32_0 = arith.constant 0 : i32
    %c0_i32_1 = arith.constant 0 : i32
    return %c0_i32, %c0_i32_0 : i32, i32
  }
  func.func @transform_9(%arg0: i32) -> (i32, i32) {
    %c0_i32 = arith.constant 0 : i32
    %c0_i32_0 = arith.constant 0 : i32
    %c0_i32_1 = arith.constant 0 : i32
    return %c0_i32, %c0_i32_0 : i32, i32
  }
  func.func @transform_10(%arg0: i32) -> (i32, i32) {
    %c0_i32 = arith.constant 0 : i32
    %c0_i32_0 = arith.constant 0 : i32
    %c0_i32_1 = arith.constant 0 : i32
    return %c0_i32, %c0_i32_0 : i32, i32
  }
  func.func @transform_11(%arg0: i32) -> (i32, i32) {
    %c0_i32 = arith.constant 0 : i32
    %c0_i32_0 = arith.constant 0 : i32
    %c0_i32_1 = arith.constant 0 : i32
    return %c0_i32, %c0_i32_0 : i32, i32
  }
  func.func @transform_12(%arg0: i32) -> (i32, i32) {
    %c0_i32 = arith.constant 0 : i32
    %c0_i32_0 = arith.constant 0 : i32
    %c0_i32_1 = arith.constant 0 : i32
    return %c0_i32, %c0_i32_0 : i32, i32
  }
  func.func @transform_13(%arg0: i32) -> (i32, i32) {
    %c0_i32 = arith.constant 0 : i32
    %c0_i32_0 = arith.constant 0 : i32
    return %arg0, %c0_i32 : i32, i32
  }
}

</mosaic_0001>

<bundles_post_ra>
// kernel: cvae_forward.1
= control target key start
LH: loop header
LB: loop body
LE: loop exit
PB: predicated region body
PF: predicated region fallthrough
CT: control target
= control target key end

     0   :  { %18 = vsyncpa [#allocation3], 0  ;;  %s1169_s0 = inlined_call_operand.vmem [shape: f32[8,16], index: 0, kind: input, shape index: {}]   ;;  %s1170_s1 = inlined_call_operand.vmem [shape: f32[8,8], index: 1, kind: input, shape index: {}]   ;;  %s1171_s2 = inlined_call_operand.vmem [shape: f32[8,128], index: 2, kind: input, shape index: {}]   ;;  %s1172_s3 = inlined_call_operand.hbm [shape: bf16[16,128], index: 3, kind: input, shape index: {}]   ;;  %s1173_s4 = inlined_call_operand.vmem [shape: bf16[8,128], index: 4, kind: input, shape index: {}]   ;;  %s1174_s5 = inlined_call_operand.vmem [shape: f32[1,128], index: 5, kind: input, shape index: {}]   ;;  %s1175_s6 = inlined_call_operand.hbm [shape: bf16[128,256], index: 6, kind: input, shape index: {}]   ;;  %s1176_s7 = inlined_call_operand.hbm [shape: f32[1,256], index: 7, kind: input, shape index: {}]   ;;  %s1177_s8 = inlined_call_operand.vmem [shape: bf16[8,128], index: 8, kind: input, shape index: {}]   ;;  %s1178_s9 = inlined_call_operand.hbm [shape: bf16[128,128], index: 9, kind: input, shape index: {}]   ;;  %s1179_s10 = inlined_call_operand.vmem [shape: f32[1,128], index: 10, kind: input, shape index: {}]   ;;  %s1180_s11 = inlined_call_operand.hbm [shape: bf16[128,128], index: 11, kind: input, shape index: {}]   ;;  %s1181_s12 = inlined_call_operand.hbm [shape: f32[1,128], index: 12, kind: input, shape index: {}]   ;;  %s1182_s13 = inlined_call_operand.vmem [shape: f32[8,384], index: 13, kind: output, shape index: {}]  }
   0x1   :  { %19 = vsyncpa [#allocation5], 0 }
   0x2   :  { %20 = vsyncpa [#allocation8], 0 }
   0x3   :  { %21 = vsyncpa [#allocation11], 0  ;;  %s992_s25 = smov [#allocation4]  }
   0x4   :  { %s49_s26 = sshll.u32 %s992_s25, 4  ;;  %s50_s26 = int_to_ptr.vmem [resolvable:$true] %s49_s26 }
   0x5   :  { %s872_s27 = scalar_lea.vmem %s50_s26, 2048  ;;  %p877_p1 = scmp.lt.s32.totalorder %s50_s26, %s50_s26 }
   0x6   :  { %p873_p0 = scmp.ne.s32.totalorder %s50_s26, %s872_s27  ;;  %p878_p2 = scmp.lt.s32.totalorder %s872_s27, %s872_s27 }
   0x8   :  { %p879_p3 = por %p878_p2, %p877_p1 }
   0xa   :  { %p880_p4 = pnand %p879_p3, %p873_p0 }
   0xc   :  { %883 = shalt.err (!%p880_p4)
}
   0xd   :  { %s993_s28 = smov 128   ;;  %s994_s29 = smov 8  }
   0xe   :  { %55 = dma.hbm_to_vmem [thread:$0]  %s1175_s6, 2048, %s50_s26, [#allocation5], %s993_s28, %s993_s28, %s994_s29  }
   0xf   :  { %s995_s15 = smov [#allocation7]   ;;  %s996_s17 = smov [#allocation2]  }
  0x10   :  { %s73_s16 = sshll.u32 %s995_s15, 4  ;;  %s33_s18 = sshll.u32 %s996_s17, 4  ;;  %s74_s16 = int_to_ptr.vmem [resolvable:$true] %s73_s16  ;;  %s34_s18 = int_to_ptr.vmem [resolvable:$true] %s33_s18 }
  0x11   :  { %s892_s19 = scalar_lea.vmem %s74_s16, 1024  ;;  %p897_p6 = scmp.lt.s32.totalorder %s74_s16, %s74_s16 }
  0x12   :  { %p893_p5 = scmp.ne.s32.totalorder %s74_s16, %s892_s19  ;;  %p898_p7 = scmp.lt.s32.totalorder %s892_s19, %s892_s19 }
  0x14   :  { %p899_p8 = por %p898_p7, %p897_p6 }
  0x16   :  { %p900_p9 = pnand %p899_p8, %p893_p5 }
  0x18   :  { %903 = shalt.err (!%p900_p9)
}
  0x19   :  { %s997_s20 = smov 64   ;;  %s998_s21 = smov 4  }
  0x1a   :  { %79 = dma.hbm_to_vmem [thread:$0]  %s1178_s9, 1024, %s74_s16, [#allocation8], %s997_s20, %s997_s20, %s998_s21  }
  0x1b   :  { %s912_s6 = scalar_lea.vmem %s34_s18, 128  ;;  %p917_p11 = scmp.lt.s32.totalorder %s34_s18, %s34_s18 }
  0x1c   :  { %p913_p10 = scmp.ne.s32.totalorder %s34_s18, %s912_s6  ;;  %p918_p12 = scmp.lt.s32.totalorder %s912_s6, %s912_s6 }
  0x1e   :  { %p919_p13 = por %p918_p12, %p917_p11 }
  0x20   :  { %p920_p0 = pnand %p919_p13, %p913_p10 }
  0x22   :  { %923 = shalt.err (!%p920_p0)
}
  0x23   :  { %39 = dma.hbm_to_vmem [thread:$0]  %s1172_s3, 128, %s34_s18, [#allocation3], %s997_s20, %s997_s20, %s998_s21  }
  0x24   :  { %s999_s26 = smov [#allocation6]   ;;  %s1000_s28 = smov [#allocation9]  }
  0x25   :  { %s62_s27 = sshll.u32 %s999_s26, 4  ;;  %s87_s9 = sshll.u32 %s1000_s28, 4  ;;  %s63_s27 = int_to_ptr.vmem [resolvable:$true] %s62_s27  ;;  %s88_s9 = int_to_ptr.vmem [resolvable:$true] %s87_s9 }
  0x26   :  { %s932_s29 = scalar_lea.vmem %s63_s27, 32  ;;  %p937_p2 = scmp.lt.s32.totalorder %s63_s27, %s63_s27 }
  0x27   :  { %p933_p1 = scmp.ne.s32.totalorder %s63_s27, %s932_s29  ;;  %p938_p3 = scmp.lt.s32.totalorder %s932_s29, %s932_s29 }
  0x29   :  { %p939_p4 = por %p938_p3, %p937_p2 }
  0x2b   :  { %p940_p5 = pnand %p939_p4, %p933_p1 }
  0x2d   :  { %943 = shalt.err (!%p940_p5)
}
  0x2e   :  { %65 = dma.hbm_to_vmem [thread:$0]  %s1176_s7, 32, %s63_s27, [#allocation5]  }
  0x2f   :  { %s952_s15 = scalar_lea.vmem %s88_s9, 1024  ;;  %p957_p7 = scmp.lt.s32.totalorder %s88_s9, %s88_s9 }
  0x30   :  { %p953_p6 = scmp.ne.s32.totalorder %s88_s9, %s952_s15  ;;  %p958_p8 = scmp.lt.s32.totalorder %s952_s15, %s952_s15 }
  0x32   :  { %p959_p9 = por %p958_p8, %p957_p7 }
  0x34   :  { %p960_p10 = pnand %p959_p9, %p953_p6 }
  0x36   :  { %963 = shalt.err (!%p960_p10)
}
  0x37   :  { %93 = dma.hbm_to_vmem [thread:$0]  %s1180_s11, 1024, %s88_s9, [#allocation8], %s997_s20, %s997_s20, %s998_s21  }
  0x38   :  { %s1001_s17 = smov [#allocation10]  }
  0x39   :  { %s100_s18 = sshll.u32 %s1001_s17, 4  ;;  %s101_s18 = int_to_ptr.vmem [resolvable:$true] %s100_s18 }
  0x3a   :  { %s972_s19 = scalar_lea.vmem %s101_s18, 16  ;;  %s976_s7 = scalar_lea.vmem %s101_s18, 32 }
  0x3b   :  { %p973_p11 = scmp.ne.s32.totalorder %s101_s18, %s972_s19  ;;  %p977_p12 = scmp.lt.s32.totalorder %s101_s18, %s101_s18 }
  0x3c   :  { %p978_p13 = scmp.lt.s32.totalorder %s976_s7, %s972_s19 }
  0x3e   :  { %p979_p0 = por %p978_p13, %p977_p12 }
  0x40   :  { %p980_p1 = pnand %p979_p0, %p973_p11 }
  0x42   :  { %983 = shalt.err (!%p980_p1)
}
  0x43   :  { %103 = dma.hbm_to_vmem [thread:$0]  %s1181_s12, 16, %s101_s18, [#allocation11]  }
  0x44   :  { %984 = dma.done.wait [#allocation3], 128  }
  0x45   :  { %985 = vsyncadd [#allocation3], 4294967168 }
  0x46   :  { %986 = dma.done.wait [#allocation5], 2080  }
  0x47   :  { %987 = vsyncadd [#allocation5], 4294965216 }
  0x48   :  { %988 = dma.done.wait [#allocation8], 2048  }
  0x49   :  { %989 = vsyncadd [#allocation8], 4294965248 }
  0x4a   :  { %990 = dma.done.wait [#allocation11], 16  }
  0x4b   :  { %991 = vsyncadd [#allocation11], 4294967280  ;;  %v1002_v0 = vmov 0.0   ;;  %vm1003_vm0 = vmmov 0   ;;  %vm134_vm1 = vcmask 1043456   ;;  %v125_v2 = vld [vmem:[%s1170_s1] sm:$0xff]  ;;  %v257_v49 = vlaneseq }
  0x4c   :  { %746 = vmatprep.subr.bf16.mxu0 %v1002_v0  ;;  %748 = vmatprep.mubr.msk.bf16.mxu0 %vm1003_vm0, %v1002_v0  ;;  %v129_v1 = vld [vmem:[%s1173_s4] sm:$0xf]  ;;  %v1115_v4 = vpack.c.bf16 %v125_v2, %v125_v2  ;;  %vm130_vm2 = vcmask 64512   ;;  %v820_v6 = vld [vmem:[#allocation4 + $0x74] ss:$8 sps:$4 sm:$0xff]   ;;  %vm184_vm3 = vcmask 130048  }
  0x4d   :  { %758 = vmatprep.subr.bf16.mxu1 %v1002_v0  ;;  %774 = vmatprep.mubr.msk.bf16.mxu1 %vm1003_vm0, %v1002_v0  ;;  %v136_v3 = vsel %vm134_vm1, %v129_v1, 0  ;;  %v817_v5 = vld [vmem:[#allocation2] sm:$0xff]   ;;  %v823_v10 = vld [vmem:[#allocation4 + $0x64] ss:$8 sps:$4 sm:$0xff]   ;;  %v821_v11 = vld [vmem:[#allocation4 + $0x60] ss:$8 sps:$4 sm:$0xff]  }
  0x4e   :  { %747 = vmatpush3.bf16.msra.mxu0 %v136_v3  ;;  %v123_v7 = vld [vmem:[%s1169_s0] sm:$0xff]  ;;  %v829_v14 = vld [vmem:[#allocation4 + $0x44] ss:$8 sps:$4 sm:$0xff]   ;;  %v827_v15 = vld [vmem:[#allocation4 + $0x40] ss:$8 sps:$4 sm:$0xff]   ;;  %v1004_v24 = vmov 0  }
  0x4f   :  { %752 = vmatprep.subr.bf16.mxu0 %v1002_v0  ;;  %v818_v8 = vld [vmem:[#allocation4 + $0x70] ss:$8 sps:$4 sm:$0xff]   ;;  %v124_v9 = vpack.c.bf16 %v123_v7, %v123_v7  ;;  %v826_v12 = vld [vmem:[#allocation4 + $0x54] ss:$8 sps:$4 sm:$0xff]   ;;  %v835_v18 = vld [vmem:[#allocation4 + $0x24] ss:$8 sps:$4 sm:$0xff]  }
  0x50   :  { %v824_v13 = vld [vmem:[#allocation4 + $0x50] ss:$8 sps:$4 sm:$0xff]   ;;  %v832_v16 = vld [vmem:[#allocation4 + $0x34] ss:$8 sps:$4 sm:$0xff]   ;;  %v833_v19 = vld [vmem:[#allocation4 + $0x20] ss:$8 sps:$4 sm:$0xff]  }
  0x51   :  { %749 = vmatmul.mubr.msk.bf16.vlgmr.msra.gmra.mxu0 %vm130_vm2, %v1115_v4  ;;  %v830_v17 = vld [vmem:[#allocation4 + $0x30] ss:$8 sps:$4 sm:$0xff]   ;;  %v838_v20 = vld [vmem:[#allocation4 + $0x14] ss:$8 sps:$4 sm:$0xff]   ;;  %v841_v22 = vld [vmem:[#allocation4 + $0x4] ss:$8 sps:$4 sm:$0xff]  }
  0x52   :  { %753 = vmatpush3.bf16.msra.mxu0 %v817_v5  ;;  %754 = vmatprep.mubr.msk.bf16.mxu0 %vm1003_vm0, %v1002_v0  ;;  %v836_v21 = vld [vmem:[#allocation4 + $0x10] ss:$8 sps:$4 sm:$0xff]   ;;  %v839_v23 = vld [vmem:[#allocation4] ss:$8 sps:$4 sm:$0xff]   ;;  %v258_v50 = vshrl.u32 %v257_v49, 7 }
  0x53   :  { %347 = vmatprep.subr.bf16.mxu0 %v820_v6  ;;  %v842_v25 = vld [vmem:[#allocation7 + $0x38] sm:$0xff]   ;;  %v685_v31 = vld [vmem:[%s1174_s5] ss:$0 sm:$0xff]  ;;  %v844_v43 = vld [vmem:[#allocation7 + $0x28] sm:$0xff]  }
  0x54   :  { %759 = vmatpush3.bf16.msra.mxu1 %v842_v25  ;;  %v394_v37 = vld [vmem:[%s1177_s8] sm:$0xf]  ;;  %v845_v44 = vld [vmem:[#allocation7 + $0x20] sm:$0xff]   ;;  %v848_v47 = vld [vmem:[#allocation7 + $0x8] sm:$0xff]   ;;  %v259_v51 = vsub.s32 0, %v258_v50  ;;  %v263_v53 = vsub.s32 1, %v258_v50 }
  0x55   :  { %760 = vmatprep.subr.bf16.mxu1 %v1002_v0  ;;  %v501_v40 = vsel %vm134_vm1, %v394_v37, 0  ;;  %v843_v42 = vld [vmem:[#allocation7 + $0x30] sm:$0xff]   ;;  %v846_v45 = vld [vmem:[#allocation7 + $0x18] sm:$0xff]   ;;  %v849_v48 = vld [vmem:[#allocation7] sm:$0xff]  }
  0x56   :  { %v847_v46 = vld [vmem:[#allocation7 + $0x10] sm:$0xff]   ;;  %v255_v52 = vld [vmem:[#allocation6] sm:$0x3] }
  0x57   :  { %v260_v54 = vrot.slane %v255_v52, %v259_v51  ;;  %v264_v55 = vrot.slane %v255_v52, %v263_v53  ;;  %v388_v5 = vld [vmem:[%s1171_s2] sm:$0xff] }
  0x58   :  { %761 = vmatpush3.bf16.msra.mxu1 %v843_v42 }
  0x59   :  { %755 = vmatmul.mubr.msk.bf16.vlgmr.msra.gmra.mxu0 %vm184_vm3, %v124_v9  ;;  %762 = vmatprep.subr.bf16.mxu1 %v1002_v0  ;;  %v850_v9 = vld [vmem:[#allocation9 + $0x38] sm:$0xff]  }
  0x5a   :  { %348 = vmatpush1.bf16.msra.mxu0 %v818_v8  ;;  %379 = vmatprep.mubr.bf16.mxu0 %v1004_v24 }
  0x5b   :  { %349 = vmatprep.subr.bf16.mxu0 %v823_v10 }
  0x5c   :  { %763 = vmatpush3.bf16.msra.mxu1 %v844_v43 }
  0x5d   :  { %764 = vmatprep.subr.bf16.mxu1 %v1002_v0 }
  0x5e   :  { %350 = vmatpush1.bf16.msra.mxu0 %v821_v11  ;;  %v851_v11 = vld [vmem:[#allocation9 + $0x30] sm:$0xff]  }
  0x5f   :  { %351 = vmatprep.subr.bf16.mxu0 %v826_v12  ;;  %v852_v12 = vld [vmem:[#allocation9 + $0x28] sm:$0xff]  }
  0x60   :  { %765 = vmatpush3.bf16.msra.mxu1 %v845_v44 }
  0x61   :  { %766 = vmatprep.subr.bf16.mxu1 %v1002_v0 }
  0x62   :  { %352 = vmatpush1.bf16.msra.mxu0 %v824_v13  ;;  %v853_v13 = vld [vmem:[#allocation9 + $0x20] sm:$0xff]  }
  0x63   :  { %353 = vmatprep.subr.bf16.mxu0 %v829_v14  ;;  %v854_v14 = vld [vmem:[#allocation9 + $0x18] sm:$0xff]  }
  0x64   :  { %767 = vmatpush3.bf16.msra.mxu1 %v846_v45 }
  0x65   :  { %768 = vmatprep.subr.bf16.mxu1 %v1002_v0 }
  0x66   :  { %354 = vmatpush1.bf16.msra.mxu0 %v827_v15  ;;  %v855_v15 = vld [vmem:[#allocation9 + $0x10] sm:$0xff]  }
  0x67   :  { %355 = vmatprep.subr.bf16.mxu0 %v832_v16  ;;  %v856_v16 = vld [vmem:[#allocation9 + $0x8] sm:$0xff]  }
  0x68   :  { %769 = vmatpush3.bf16.msra.mxu1 %v847_v46 }
  0x69   :  { %770 = vmatprep.subr.bf16.mxu1 %v1002_v0 }
  0x6a   :  { %356 = vmatpush1.bf16.msra.mxu0 %v830_v17  ;;  %v857_v17 = vld [vmem:[#allocation9] sm:$0xff]  }
  0x6b   :  { %357 = vmatprep.subr.bf16.mxu0 %v835_v18 }
  0x6c   :  { %771 = vmatpush3.bf16.msra.mxu1 %v848_v47 }
  0x6d   :  { %772 = vmatprep.subr.bf16.mxu1 %v1002_v0 }
  0x6e   :  { %358 = vmatpush1.bf16.msra.mxu0 %v833_v19  ;;  %v711_v19 = vld [vmem:[%s1179_s10] ss:$0 sm:$0xff] }
  0x6f   :  { %359 = vmatprep.subr.bf16.mxu0 %v838_v20 }
  0x70   :  { %773 = vmatpush3.bf16.msra.mxu1 %v849_v48 }
  0x71   :  { %784 = vmatprep.subr.bf16.mxu1 %v1002_v0 }
  0x72   :  { %360 = vmatpush1.bf16.msra.mxu0 %v836_v21 }
  0x73   :  { %361 = vmatprep.subr.bf16.mxu0 %v841_v22 }
  0x76   :  { %362 = vmatpush1.bf16.msra.mxu0 %v839_v23 }
  0x77   :  { %778 = vmatprep.subr.bf16.mxu0 %v1002_v0 }
 0x111   :  { %v172_v26 = vpop.f32.mrf.mxu0 }
 0x113   :  { %v750_v27 = vpop.f32.mrf.mxu0 }
 0x115   :  { %v175_v28 = vpop.f32.mrf.mxu0 }
 0x116   :  { %v712_v28 = vld [vmem:[#allocation10] ss:$0 sm:$0xff] }
 0x117   :  { %v751_v29 = vpop.f32.mrf.mxu0 }
 0x119   :  { %v222_v30 = vpop.f32.mrf.mxu0 }
 0x11a   :  { %v223_v32 = vadd.f32 %v222_v30, %v172_v26 }
 0x11b   :  { %v756_v33 = vpop.f32.mrf.mxu0 }
 0x11c   :  { %v235_v34 = vadd.f32 %v685_v31, %v223_v32 }
 0x11d   :  { %v225_v35 = vpop.f32.mrf.mxu0 }
 0x11e   :  { %v236_v36 = vmul.f32 0.2, %v235_v34 }
 0x11f   :  { %v757_v38 = vpop.f32.mrf.mxu0 }
 0x120   :  { %v237_v39 = vmax.f32 %v235_v34, %v236_v36 }
 0x122   :  { %v238_v41 = vpack.c.bf16 %v237_v39, %v237_v39 }
 0x124   :  { %380 = vmatmul.mubr.bf16.vlgmr.msra.gmra.mxu0 %v238_v41 }
 0x125   :  { %779 = vmatpush3.bf16.msra.mxu0 %v501_v40  ;;  %780 = vmatprep.mubr.msk.bf16.mxu0 %vm1003_vm0, %v1002_v0 }
 0x12c   :  { %781 = vmatmul.mubr.msk.bf16.vlgmr.msra.gmra.mxu0 %vm130_vm2, %v1115_v4 }
 0x1e4   :  { %v381_v56 = vpop.f32.mrf.mxu0 }
 0x1e5   :  { %v382_v57 = vadd.f32 %v381_v56, %v260_v54 }
 0x1e6   :  { %v383_v58 = vpop.f32.mrf.mxu0 }
 0x1e7   :  { %672 = vst [vmem:[%s1182_s13 + $0x8] sm:$0xff] %v382_v57  ;;  %v384_v59 = vadd.f32 %v383_v58, %v264_v55 }
 0x1e8   :  { %v385_v60 = vpop.f32.mrf.mxu0 }
 0x1e9   :  { %v389_v61 = vmul.f32 0.5, %v384_v59  ;;  %673 = vst [vmem:[%s1182_s13 + $0x10] sm:$0xff] %v384_v59 }
 0x1ea   :  { %v386_v62 = vpop.f32.mrf.mxu0 }
 0x1eb   :  { %v390_v63 = vmul.f32 1.442695, %v389_v61 }
 0x1ec   :  { %v537_v1 = vpop.f32.mrf.mxu0 }
 0x1ed   :  { %858 = vpow2.f32 %v390_v63 }
 0x1ee   :  { %v782_v2 = vpop.f32.mrf.mxu0 }
 0x1f0   :  { %v540_v3 = vpop.f32.mrf.mxu0 }
 0x1f2   :  { %v783_v4 = vpop.f32.mrf.mxu0 }
 0x1fa   :  { %v859_v6 = vpop.eup %858 }
 0x1fb   :  { %v392_v7 = vmul.f32 %v859_v6, %v388_v5 }
 0x1fd   :  { %v393_v8 = vadd.f32 %v392_v7, %v382_v57 }
 0x1ff   :  { %v395_v10 = vpack.c.bf16 %v393_v8, %v393_v8 }
 0x201   :  { %775 = vmatmul.mubr.bf16.vlgmr.msra.gmra.mxu1 %v395_v10 }
 0x202   :  { %785 = vmatpush3.bf16.msra.mxu1 %v850_v9  ;;  %800 = vmatprep.mubr.msk.bf16.mxu1 %vm1003_vm0, %v1002_v0 }
 0x203   :  { %786 = vmatprep.subr.bf16.mxu1 %v1002_v0 }
 0x206   :  { %787 = vmatpush3.bf16.msra.mxu1 %v851_v11 }
 0x207   :  { %788 = vmatprep.subr.bf16.mxu1 %v1002_v0 }
 0x20a   :  { %789 = vmatpush3.bf16.msra.mxu1 %v852_v12 }
 0x20b   :  { %790 = vmatprep.subr.bf16.mxu1 %v1002_v0 }
 0x20e   :  { %791 = vmatpush3.bf16.msra.mxu1 %v853_v13 }
 0x20f   :  { %792 = vmatprep.subr.bf16.mxu1 %v1002_v0 }
 0x212   :  { %793 = vmatpush3.bf16.msra.mxu1 %v854_v14 }
 0x213   :  { %794 = vmatprep.subr.bf16.mxu1 %v1002_v0 }
 0x216   :  { %795 = vmatpush3.bf16.msra.mxu1 %v855_v15 }
 0x217   :  { %796 = vmatprep.subr.bf16.mxu1 %v1002_v0 }
 0x21a   :  { %797 = vmatpush3.bf16.msra.mxu1 %v856_v16 }
 0x21b   :  { %798 = vmatprep.subr.bf16.mxu1 %v1002_v0 }
 0x21e   :  { %799 = vmatpush3.bf16.msra.mxu1 %v857_v17 }
 0x2c1   :  { %v494_v18 = vpop.f32.mrf.mxu1 }
 0x2c2   :  { %v538_v20 = vadd.f32 %v537_v1, %v494_v18 }
 0x2c3   :  { %v776_v21 = vpop.f32.mrf.mxu1 }
 0x2c4   :  { %v550_v22 = vadd.f32 %v711_v19, %v538_v20 }
 0x2c5   :  { %v497_v23 = vpop.f32.mrf.mxu1 }
 0x2c6   :  { %v551_v24 = vmul.f32 0.2, %v550_v22 }
 0x2c7   :  { %v777_v25 = vpop.f32.mrf.mxu1 }
 0x2c8   :  { %v552_v26 = vmax.f32 %v550_v22, %v551_v24 }
 0x2ca   :  { %v553_v27 = vpack.c.bf16 %v552_v26, %v552_v26 }
 0x2cc   :  { %801 = vmatmul.mubr.bf16.vlgmr.msra.gmra.mxu1 %v553_v27 }
 0x38c   :  { %v659_v29 = vpop.f32.mrf.mxu1 }
 0x38d   :  { %v660_v30 = vadd.f32 %v712_v28, %v659_v29 }
 0x38e   :  { %v802_v0 = vpop.f32.mrf.mxu1 }
 0x38f   :  { %v721_v31 = vmul.f32 -1.442695, %v660_v30 }
 0x390   :  { %v662_v32 = vpop.f32.mrf.mxu1 }
 0x391   :  { %860 = vpow2.f32 %v721_v31 }
 0x392   :  { %v803_v33 = vpop.f32.mrf.mxu1 }
 0x39e   :  { %v861_v34 = vpop.eup %860 }
 0x39f   :  { %v668_v35 = vadd.f32 1.0, %v861_v34 }
 0x3a1   :  { %862 = vrcp.f32 %v668_v35 }
 0x3ae   :  { %v863_v36 = vpop.eup %862 }
 0x3af   :  { %671 = vst [vmem:[%s1182_s13] sm:$0xff] %v863_v36 }
 0x3b0   :  { %678 = vsyncpa [#allocation3], 1 }
 0x3b1   :  { %679 = vsyncpa [#allocation5], 1 }
 0x3b2   :  { %680 = vsyncpa [#allocation8], 1 }
 0x3b3   :  { %681 = vsyncpa [#allocation11], 1 }

</bundles_post_ra>
